<compile_context>
chip_gen: v5e
topology: v5e:2x2
jax: 0.10.0
libtpu: 0.0.40
codegen_flags: <defaults>
</compile_context>

<pallas_src>
import functools

import numpy as np
import jax
import jax.numpy as jnp
from jax import lax
from jax.experimental import pallas as pl
from jax.experimental.pallas import tpu as pltpu


# --------------------------------------------------------------------------
# Reference (mirrors the PyTorch module)
# --------------------------------------------------------------------------

def make_haar_weights(in_channels: int) -> jnp.ndarray:
    """Deterministically build the (4*C, 1, 2, 2) weights as in __init__."""
    w = np.ones((4, 1, 2, 2), dtype=np.float32)
    w[1, 0, 0, 1] = -1.0
    w[1, 0, 1, 1] = -1.0
    w[2, 0, 1, 0] = -1.0
    w[2, 0, 1, 1] = -1.0
    w[3, 0, 1, 0] = -1.0
    w[3, 0, 0, 1] = -1.0
    return jnp.asarray(np.concatenate([w] * in_channels, axis=0))


def haar_wavelet_forward_ref(x: jnp.ndarray, haar_weights: jnp.ndarray) -> jnp.ndarray:
    """Pure-JAX reference mirroring the PyTorch forward (grouped conv path)."""
    N, C, H, W = x.shape
    out = lax.conv_general_dilated(
        x, haar_weights,
        window_strides=(2, 2), padding="VALID",
        dimension_numbers=("NCHW", "OIHW", "NCHW"),
        feature_group_count=C,
    ) / 4.0
    out = out.reshape(N, C, 4, H // 2, W // 2)
    out = jnp.transpose(out, (0, 2, 1, 3, 4))
    return out.reshape(N, 4 * C, H // 2, W // 2)


# --------------------------------------------------------------------------
# Constants & planning
# --------------------------------------------------------------------------

@functools.lru_cache(maxsize=None)
def _haar_group_matrix_np(wg: int) -> np.ndarray:
    """(Wg, Wg) constant: cols [0:Wg/2] = 0.25*(even+odd lane pairs),
    cols [Wg/2:Wg] = 0.25*(even-odd lane pairs).  On the MXU it performs the
    horizontal butterfly + even-lane compaction of one lane group in one
    matmul (avoids lane-strided gathers)."""
    wgh = wg // 2
    m = np.zeros((wg, wg), dtype=np.float32)
    j = np.arange(wgh)
    m[2 * j, j] = 0.25
    m[2 * j + 1, j] = 0.25
    m[2 * j, wgh + j] = 0.25
    m[2 * j + 1, wgh + j] = -0.25
    return m


def _tpu_generation() -> int:
    try:
        kind = jax.devices()[0].device_kind.lower()
    except Exception:
        return 6
    for g in (7, 6, 5, 4, 3):
        if f"v{g}" in kind:
            return g
    return 6


# Block-size target and scoped-VMEM cap per generation (bytes).
_GEN_BLOCK_TARGET = {3: 4 << 20, 4: 4 << 20, 5: 4 << 20, 6: 6 << 20, 7: 6 << 20}
_GEN_VMEM_CAP = {3: 64 << 20, 4: 64 << 20, 5: 64 << 20, 6: 64 << 20, 7: 48 << 20}


def _choose_lane_group(W: int, gen: int) -> int:
    """Lane-group width for the block-diagonal butterfly matrix."""
    pref = 256 if gen >= 6 else 128   # 256x256 MXU on v6e/v7x, 128 keeps v5e HBM-bound
    for wg in (pref, 128):
        if W >= wg and W % wg == 0:
            return wg
    return W  # small / irregular widths: single dense group


def _plan_tiles(n_batch: int, C: int, Hh: int, W: int, itemsize: int, gen: int):
    """Pick (Wg, Rb, vmem_limit): lane group, row tile of the folded (C*Hh)
    axis, and an explicit scoped-VMEM limit derived from the actual budget."""
    R = C * Hh
    Wg = _choose_lane_group(W, gen)
    mh_bytes = Wg * Wg * 4                      # f32 upper bound
    row_bytes = 2 * W * itemsize
    cap = _GEN_VMEM_CAP.get(gen, 64 << 20)
    target = _GEN_BLOCK_TARGET.get(gen, 4 << 20)

    # ~6x block covers double-buffered input + output plus in-kernel temporaries.
    afford = max(8 * row_bytes, (cap - 2 * mh_bytes - (4 << 20)) // 6)
    max_rows = max(1, min(target, afford) // row_bytes)

    divisors = [d for d in range(1, R + 1) if R % d == 0]
    # Legal second-to-last block dims: multiple of 8, or the full extent.
    legal = sorted(set(d for d in divisors if d % 8 == 0) | {R})
    fitting = [d for d in legal if d <= max_rows]
    Rb = max(fitting) if fitting else min(legal)

    # Megacore balance: make sure the grid has >= 2 steps so both TensorCores
    # (v7x) get work; prefer splitting the row axis when N == 1.
    if n_batch * (R // Rb) < 2:
        smaller = [d for d in legal if d < Rb]
        if smaller:
            Rb = max(smaller)

    block_bytes = Rb * row_bytes
    budget = 6 * block_bytes + 2 * mh_bytes + (4 << 20)
    hard_cap = (56 << 20) if gen >= 7 else (100 << 20)
    vmem_limit = int(min(hard_cap, max(32 << 20, budget)))
    return Wg, Rb, vmem_limit


# --------------------------------------------------------------------------
# Kernel
# --------------------------------------------------------------------------

def haar_forward_kernel(mh_ref, x_ref, o_ref):
    """mh_ref: VMEM (Wg, Wg) +-0.25 butterfly/compaction constant (constant
             index map -> fetched once, stays resident).
    x_ref : VMEM (1, Rb, 2W) block; each row is [top row | bottom row] of one
            2x2 patch row of one channel (free-reshape layout).
    o_ref : VMEM (1, 4, Rb, W//2) block; quadrant order A, H, V, D."""
    Wg = mh_ref.shape[0]
    Wgh = Wg // 2
    W = x_ref.shape[2] // 2
    ngroups = W // Wg
    cdt = mh_ref.dtype                      # f32, or bf16 fast path
    mh = mh_ref[...]
    for g in range(ngroups):                # static unroll over 128/256-lane groups
        lo = g * Wg
        t = x_ref[0, :, lo:lo + Wg].astype(cdt)           # rows 2i  : a b a b ...
        b = x_ref[0, :, W + lo:W + lo + Wg].astype(cdt)   # rows 2i+1: c d c d ...
        # Vertical butterfly on the VPU; horizontal butterfly + even-lane
        # compaction as one (Rb,Wg)x(Wg,Wg) matmul on the otherwise-idle MXU:
        #   P[:, :Wgh] = 0.25*(a+b+c+d) = A     P[:, Wgh:] = 0.25*(a-b+c-d) = H
        #   Q[:, :Wgh] = 0.25*(a+b-c-d) = V     Q[:, Wgh:] = 0.25*(a-b-c+d) = D
        P = jnp.dot(t + b, mh, preferred_element_type=jnp.float32)
        Q = jnp.dot(t - b, mh, preferred_element_type=jnp.float32)
        oo = g * Wgh                        # 128-aligned output lane offset
        o_ref[0, 0, :, oo:oo + Wgh] = P[:, :Wgh].astype(o_ref.dtype)
        o_ref[0, 1, :, oo:oo + Wgh] = P[:, Wgh:].astype(o_ref.dtype)
        o_ref[0, 2, :, oo:oo + Wgh] = Q[:, :Wgh].astype(o_ref.dtype)
        o_ref[0, 3, :, oo:oo + Wgh] = Q[:, Wgh:].astype(o_ref.dtype)


# --------------------------------------------------------------------------
# Wrapper
# --------------------------------------------------------------------------

def haar_wavelet_forward(x: jnp.ndarray) -> jnp.ndarray:
    """Equivalent of HaarWavelet.forward(x, rev=False).

    x: (N, C, H, W) -> (N, 4*C, H//2, W//2), AHVD channel-major.
    Requires even H and W (same as the 2x2 / stride-2 conv).
    """
    N, C, H, W = x.shape
    assert H % 2 == 0 and W % 2 == 0, "HaarWavelet forward requires even H and W"
    Hh, Wh = H // 2, W // 2
    R = C * Hh

    gen = _tpu_generation()
    itemsize = jnp.dtype(x.dtype).itemsize
    Wg, Rb, vmem_limit = _plan_tiles(N, C, Hh, W, itemsize, gen)

    # bf16 fast path: keep data + constant in bf16 (+-0.25 is exact), accumulate f32.
    compute_dtype = jnp.bfloat16 if x.dtype == jnp.bfloat16 else jnp.float32
    mh = jnp.asarray(_haar_group_matrix_np(Wg), dtype=compute_dtype)

    # Free reshape (no data movement): row (c*Hh + i) of xr holds
    # [x[n, c, 2i, :], x[n, c, 2i+1, :]].
    xr = x.reshape(N, R, 2 * W)

    # Advisory: the kernel is memory-bound.
    bytes_accessed = 2 * N * C * H * W * itemsize + mh.size * mh.dtype.itemsize
    flops = 4 * N * R * W * Wg + 4 * N * R * W

    out = pl.pallas_call(
        haar_forward_kernel,
        out_shape=jax.ShapeDtypeStruct((N, 4, R, Wh), x.dtype),
        grid=(N, R // Rb),
        in_specs=[
            # Constant matrix: index map never changes -> fetched once.
            pl.BlockSpec((Wg, Wg), lambda n, r: (0, 0)),
            pl.BlockSpec((1, Rb, 2 * W), lambda n, r: (n, r, 0)),
        ],
        out_specs=pl.BlockSpec((1, 4, Rb, Wh), lambda n, r: (n, 0, r, 0)),
        compiler_params=pltpu.CompilerParams(
            dimension_semantics=("parallel", "parallel"),
            vmem_limit_bytes=vmem_limit,
        ),
        cost_estimate=pl.CostEstimate(
            flops=flops, transcendentals=0, bytes_accessed=bytes_accessed),
    )(mh, xr)

    # (N, 4, C*Hh, Wh) -> (N, 4*C, Hh, Wh): AHVD channel-major, free reshape.
    return out.reshape(N, 4 * C, Hh, Wh)


# --------------------------------------------------------------------------

if __name__ == "__main__":
    N, C, H, W = 2, 4, 16, 16
    key = jax.random.PRNGKey(0)
    x = jax.random.normal(key, (N, C, H, W), dtype=jnp.float32)

    y = haar_wavelet_forward(x)
    y = jax.block_until_ready(y)

    haar_weights = make_haar_weights(C)  # deterministic, mirrors nn.Parameter init
    y_ref = haar_wavelet_forward_ref(x, haar_weights)

    assert y.shape == (N, 4 * C, H // 2, W // 2), y.shape
    np.testing.assert_allclose(np.asarray(y), np.asarray(y_ref), rtol=1e-5, atol=1e-5)

    print("KERNEL_OK")
</pallas_src>

<mosaic_0001>
module attributes {stable_mosaic.version = 11 : i64} {
  func.func @haar_forward_kernel(%arg0: i32, %arg1: i32, %arg2: memref<16x16xf32, #tpu.memory_space<vmem>>, %arg3: memref<1x32x32xf32, #tpu.memory_space<vmem>>, %arg4: memref<1x4x32x8xf32, #tpu.memory_space<vmem>>) attributes {dimension_semantics = [#tpu.dimension_semantics<parallel>, #tpu.dimension_semantics<parallel>], iteration_bounds = array<i64: 2, 1>, scalar_prefetch = 0 : i64, scratch_operands = 0 : i64, tpu.core_type = #tpu.core_type<tc>, window_params = [{pipeline_mode = #tpu.pipeline_mode<synchronous>, transform_indices = @transform_0, window_bounds = array<i64: 16, 16>}, {transform_indices = @transform_1, window_bounds = array<i64: 1, 32, 32>}, {transform_indices = @transform_2, window_bounds = array<i64: 1, 4, 32, 8>}]} {
    %c0 = arith.constant 0 : index
    %c0_0 = arith.constant 0 : index
    %0 = vector.load %arg2[%c0, %c0_0] : memref<16x16xf32, #tpu.memory_space<vmem>>, vector<16x16xf32>
    %c0_1 = arith.constant 0 : index
    %c0_2 = arith.constant 0 : index
    %c0_3 = arith.constant 0 : index
    %1 = vector.load %arg3[%c0_1, %c0_2, %c0_3] : memref<1x32x32xf32, #tpu.memory_space<vmem>>, vector<1x32x16xf32>
    %2 = vector.shape_cast %1 : vector<1x32x16xf32> to vector<32x16xf32>
    %c0_4 = arith.constant 0 : index
    %c0_5 = arith.constant 0 : index
    %c16 = arith.constant 16 : index
    %3 = vector.load %arg3[%c0_4, %c0_5, %c16] : memref<1x32x32xf32, #tpu.memory_space<vmem>>, vector<1x32x16xf32>
    %4 = vector.shape_cast %3 : vector<1x32x16xf32> to vector<32x16xf32>
    %5 = arith.addf %2, %4 : vector<32x16xf32>
    %cst = arith.constant dense<0.000000e+00> : vector<32x16xf32>
    %6 = tpu.matmul %5, %0, %cst {dimension_numbers = #tpu.dot_dimension_numbers<[1], [0], [0], [1], [0, 0, 1, 1], [], []>} : vector<32x16xf32>, vector<16x16xf32>, vector<32x16xf32> -> vector<32x16xf32>
    %7 = arith.subf %2, %4 : vector<32x16xf32>
    %cst_6 = arith.constant dense<0.000000e+00> : vector<32x16xf32>
    %8 = tpu.matmul %7, %0, %cst_6 {dimension_numbers = #tpu.dot_dimension_numbers<[1], [0], [0], [1], [0, 0, 1, 1], [], []>} : vector<32x16xf32>, vector<16x16xf32>, vector<32x16xf32> -> vector<32x16xf32>
    %9 = vector.extract_strided_slice %6 {offsets = [0, 0], sizes = [32, 8], strides = [1, 1]} : vector<32x16xf32> to vector<32x8xf32>
    %c0_7 = arith.constant 0 : index
    %c0_8 = arith.constant 0 : index
    %c0_9 = arith.constant 0 : index
    %c0_10 = arith.constant 0 : index
    %10 = vector.load %arg4[%c0_7, %c0_8, %c0_9, %c0_10] : memref<1x4x32x8xf32, #tpu.memory_space<vmem>>, vector<1x1x32x8xf32>
    %11 = vector.shape_cast %10 : vector<1x1x32x8xf32> to vector<32x8xf32>
    %12 = vector.shape_cast %9 : vector<32x8xf32> to vector<1x1x32x8xf32>
    tpu.vector_store %arg4[%c0_7, %c0_8, %c0_9, %c0_10], %12 {strides = array<i32>} : memref<1x4x32x8xf32, #tpu.memory_space<vmem>>, vector<1x1x32x8xf32>,
    %13 = vector.extract_strided_slice %6 {offsets = [0, 8], sizes = [32, 8], strides = [1, 1]} : vector<32x16xf32> to vector<32x8xf32>
    %c0_11 = arith.constant 0 : index
    %c1 = arith.constant 1 : index
    %c0_12 = arith.constant 0 : index
    %c0_13 = arith.constant 0 : index
    %14 = vector.load %arg4[%c0_11, %c1, %c0_12, %c0_13] : memref<1x4x32x8xf32, #tpu.memory_space<vmem>>, vector<1x1x32x8xf32>
    %15 = vector.shape_cast %14 : vector<1x1x32x8xf32> to vector<32x8xf32>
    %16 = vector.shape_cast %13 : vector<32x8xf32> to vector<1x1x32x8xf32>
    tpu.vector_store %arg4[%c0_11, %c1, %c0_12, %c0_13], %16 {strides = array<i32>} : memref<1x4x32x8xf32, #tpu.memory_space<vmem>>, vector<1x1x32x8xf32>,
    %17 = vector.extract_strided_slice %8 {offsets = [0, 0], sizes = [32, 8], strides = [1, 1]} : vector<32x16xf32> to vector<32x8xf32>
    %c0_14 = arith.constant 0 : index
    %c2 = arith.constant 2 : index
    %c0_15 = arith.constant 0 : index
    %c0_16 = arith.constant 0 : index
    %18 = vector.load %arg4[%c0_14, %c2, %c0_15, %c0_16] : memref<1x4x32x8xf32, #tpu.memory_space<vmem>>, vector<1x1x32x8xf32>
    %19 = vector.shape_cast %18 : vector<1x1x32x8xf32> to vector<32x8xf32>
    %20 = vector.shape_cast %17 : vector<32x8xf32> to vector<1x1x32x8xf32>
    tpu.vector_store %arg4[%c0_14, %c2, %c0_15, %c0_16], %20 {strides = array<i32>} : memref<1x4x32x8xf32, #tpu.memory_space<vmem>>, vector<1x1x32x8xf32>,
    %21 = vector.extract_strided_slice %8 {offsets = [0, 8], sizes = [32, 8], strides = [1, 1]} : vector<32x16xf32> to vector<32x8xf32>
    %c0_17 = arith.constant 0 : index
    %c3 = arith.constant 3 : index
    %c0_18 = arith.constant 0 : index
    %c0_19 = arith.constant 0 : index
    %22 = vector.load %arg4[%c0_17, %c3, %c0_18, %c0_19] : memref<1x4x32x8xf32, #tpu.memory_space<vmem>>, vector<1x1x32x8xf32>
    %23 = vector.shape_cast %22 : vector<1x1x32x8xf32> to vector<32x8xf32>
    %24 = vector.shape_cast %21 : vector<32x8xf32> to vector<1x1x32x8xf32>
    tpu.vector_store %arg4[%c0_17, %c3, %c0_18, %c0_19], %24 {strides = array<i32>} : memref<1x4x32x8xf32, #tpu.memory_space<vmem>>, vector<1x1x32x8xf32>,
    return
  }
  func.func @transform_0(%arg0: i32, %arg1: i32) -> (i32, i32) {
    %c0_i32 = arith.constant 0 : i32
    %c0_i32_0 = arith.constant 0 : i32
    %c0_i32_1 = arith.constant 0 : i32
    return %c0_i32, %c0_i32_0 : i32, i32
  }
  func.func @transform_1(%arg0: i32, %arg1: i32) -> (i32, i32, i32) {
    %c0_i32 = arith.constant 0 : i32
    %c0_i32_0 = arith.constant 0 : i32
    return %arg0, %arg1, %c0_i32 : i32, i32, i32
  }
  func.func @transform_2(%arg0: i32, %arg1: i32) -> (i32, i32, i32, i32) {
    %c0_i32 = arith.constant 0 : i32
    %c0_i32_0 = arith.constant 0 : i32
    %c0_i32_1 = arith.constant 0 : i32
    return %arg0, %c0_i32, %arg1, %c0_i32_0 : i32, i32, i32, i32
  }
}

</mosaic_0001>

<bundles_post_ra>
// kernel: tpu_custom_call.1
= control target key start
LH: loop header
LB: loop body
LE: loop exit
PB: predicated region body
PF: predicated region fallthrough
CT: control target
= control target key end

     0   :  { %7 = vsyncpa [#allocation3], 0  ;;  %s883_s0 = inlined_call_operand.hbm [shape: f32[16,16], index: 0, kind: input, shape index: {}]   ;;  %s884_s1 = inlined_call_operand.hbm [shape: f32[2,32,32], index: 1, kind: input, shape index: {}]   ;;  %s885_s2 = inlined_call_operand.vmem [shape: f32[2,4,32,8], index: 2, kind: output, shape index: {}]  }
   0x1   :  { %8 = vsyncpa [#allocation5], 0 }
   0x2   :  { %10 = vsyncpa [#allocation5 + $0x1], 0  ;;  %s730_s9 = smov 0   ;;  %s732_s10 = smov 0  }
   0x3   :  { %s734_s11 = smov 0   ;;  %s736_s12 = smov 0  }
   0x4   :  { %s738_s13 = smov 0   ;;  %s740_s14 = smov 0  }
   0x5 LB: > { %s483_s15 = sadd.s32 4294967295, %s708_s14   ;;  %p71_p0 = scmp.ne.s32.totalorder %s692_s10, %s688_s9  ;;  %s708_s14 = sphi %s740_s14, %s16_s14   ;;  %s704_s13 = sphi %s738_s13, %s894_s13   ;;  %s700_s12 = sphi %s736_s12, %s893_s12   ;;  %s696_s11 = sphi %s734_s11, %s892_s11   ;;  %s692_s10 = sphi %s732_s10, %s891_s10   ;;  %s688_s9 = sphi %s730_s9, %s890_s9  }
   0x6   : > { %p760_p1 = scmp.eq.s32.totalorder %s483_s15, 0  ;;  %p485_p2 = scmp.ge.s32.totalorder %s708_s14, 1 }
   0x7   : > { %p110_p3 = scmp.lt.s32.totalorder %s708_s14, 3  ;;  %s121_s20 = sshll.u32 %s883_s0, 4  ;;  %s122_s20 = int_to_ptr.hbm [resolvable:$true] %s121_s20 }
   0x8   : > { %p768_p4 = por %p760_p1, %p71_p0  ;;  %s710_s22 = smov [#allocation2]  }
   0x9   : > { %p775_p5 = pnand %p485_p2, %p110_p3  ;;  %s123_s23 = sshll.u32 %s710_s22, 4  ;;  %s124_s23 = int_to_ptr.vmem [resolvable:$true] %s123_s23 }
   0xa   : > { %s711_s24 = smov 128   ;;  %s712_s25 = smov 8  }
   0xb   : > { %p530_p6 = pneg %p775_p5  ;;  %s28_s26 = sadd.s32 1, %s704_s13 }
   0xc   : > { %p30_p8 = scmp.ge.s32.totalorder %s28_s26, 2  ;;  %p65_p9 = scmp.ne.s32.totalorder %s696_s11, %s692_s10 }
   0xd   : > { %p531_p7 = pnand %p530_p6, %p760_p1  ;;  %p66_p10 = scmp.eq.s32.totalorder %s708_s14, 0 }
   0xe   : > { %s896_s26 = smov (%p30_p8, %s28_s26), 0  ;;  %s58_s27 = sadd.s32 1, %s696_s11 }
   0xf   : > { %533 = dma.hbm_to_vmem [thread:$0]  (!%p531_p7), %s122_s20, 256, %s124_s23, [#allocation3], %s711_s24, %s711_s24, %s712_s25  }
  0x10   : > { %p790_p11 = por %p66_p10, %p65_p9  ;;  %s53_s29 = ssub.s32 %s704_s13, %s896_s26 }
  0x11   : > { %s137_s30 = sand.u32 1, %s696_s11   ;;  %p56_p12 = scmp.eq.s32.totalorder %s53_s29, 0 }
  0x12   : > { %p539_p13 = scmp.lt.s32.totalorder %s708_s14, 2  ;;  %s488_s3 = sshll.u32 %s137_s30, 5 }
  0x13   : > { %s518_s4 = sshll.u32 %s704_s13, 5  ;;  %s141_s15 = scalar_lea.vmem [#allocation4], %s488_s3 }
  0x14   : > { %s800_s5 = scalar_select %p56_p12, %s696_s11, %s58_s27  }
  0x15   : > { %s148_s8 = scalar_lea.hbm %s884_s1, %s518_s4  ;;  %s151_s18 = sshll.u32 %s141_s15, 4  ;;  %s152_s18 = int_to_ptr.vmem [resolvable:$true] %s151_s18 }
  0x16   : > { %s149_s9 = sshll.u32 %s148_s8, 4  ;;  %p535_p0 = pnand %p539_p13, %p790_p11  ;;  %s150_s9 = int_to_ptr.hbm [resolvable:$true] %s149_s9 }
  0x17   : > { %s138_s19 = scalar_lea.sflag [#allocation5], %s137_s30  ;;  %163 = sbr.rel (%p775_p5) target bundleno = 415 (0x19f), region = 28 }
  0x18   : > { %537 = dma.hbm_to_vmem [thread:$0]  (!%p535_p0), %s150_s9, 512, %s152_s18, %s138_s19, %s711_s24, %s711_s24, %s712_s25  }
  0x1c   : > { %679 = dma.done.wait (%p760_p1), [#allocation3], 256  }
  0x1d   : > { %681 = vsyncadd (%p760_p1), [#allocation3], 4294967040  ;;  %s170_s20 = sand.u32 1, %s692_s10  }
  0x1e   : > { %s493_s22 = sshll.u32 %s170_s20, 5  ;;  %s171_s23 = scalar_lea.sflag [#allocation5], %s170_s20 }
  0x1f   : > { %s174_s27 = scalar_lea.vmem [#allocation4], %s493_s22 }
  0x20   : > { %683 = dma.done.wait (%p768_p4), %s171_s23, 512  }
  0x21   : > { %685 = vsyncadd (%p768_p4), %s171_s23, 4294966784  ;;  %v215_v0 = vld [vmem:[%s174_s27 + $0x10] sm:$0xff]  ;;  %v216_v1 = vld [vmem:[%s174_s27 + $0x18] sm:$0xff]  ;;  %s713_s21 = smov 112   ;;  %vm237_vm0 = vcmask 130048   ;;  %p202_p1 = scmp.lt.s32.totalorder %s700_s12, 1 }
  0x22   : > { %225 = vrot.lane.b32.xlu0 %v215_v0, %s713_s21  ;;  %227 = vrot.lane.b32.xlu1 %v216_v1, %s713_s21  ;;  %v213_v2 = vld [vmem:[%s174_s27] sm:$0xff]  ;;  %v214_v3 = vld [vmem:[%s174_s27 + $0x8] sm:$0xff]  ;;  %v212_v4 = vld [vmem:[#allocation2 + $0x8] sm:$0xff]  ;;  %vm324_vm1 = vcmask 64512   ;;  %s714_s28 = smov 120  }
  0x23   : > { %520 = vmatpush.msra.mxu2 %v212_v4  ;;  %522 = vmatpush.msra.mxu3 %v212_v4  ;;  %v211_v5 = vld [vmem:[#allocation2] sm:$0xff]  ;;  %s898_s12 = smov (!%p202_p1, %s700_s12), 1 }
  0x24   : > { %264 = vmatpush.msra.mxu0 %v212_v4  ;;  %309 = vmatpush.msra.mxu1 %v212_v4  ;;  %s519_s16 = sshll.u32 %s898_s12, 7 }
  0x25   : > { %521 = vmatpush.msra.mxu2 %v211_v5  ;;  %523 = vmatpush.msra.mxu3 %v211_v5  ;;  %s831_s25 = scalar_lea.vmem %s885_s2, %s519_s16 }
  0x26   : > { %265 = vmatpush.msra.mxu0 %v211_v5  ;;  %310 = vmatpush.msra.mxu1 %v211_v5 }
  0x2a   : > { %221 = vrot.lane.b32.xlu0 %v213_v2, %s713_s21  ;;  %223 = vrot.lane.b32.xlu1 %v214_v3, %s713_s21 }
  0x94   : > { %v226_v6 = vpop.permute.xlu0 %225  ;;  %v228_v9 = vpop.permute.xlu1 %227 }
  0x95   : > { %v235_v7 = vadd.f32 %v226_v6, %v215_v0  ;;  %v281_v8 = vsub.f32 %v215_v0, %v226_v6  ;;  %v236_v10 = vadd.f32 %v228_v9, %v216_v1  ;;  %v282_v11 = vsub.f32 %v216_v1, %v228_v9 }
  0x97   : > { %498 = vmatmul.msk.f32.vlgmr.msra.gmra.mxu2 %vm237_vm0, %v235_v7  ;;  %502 = vmatmul.msk.f32.vlgmr.msra.gmra.mxu3 %vm237_vm0, %v281_v8 }
  0x9c   : > { %v222_v12 = vpop.permute.xlu0 %221  ;;  %v224_v15 = vpop.permute.xlu1 %223 }
  0x9d   : > { %v233_v13 = vadd.f32 %v222_v12, %v213_v2  ;;  %v279_v14 = vsub.f32 %v213_v2, %v222_v12  ;;  %v234_v16 = vadd.f32 %v224_v15, %v214_v3  ;;  %v280_v17 = vsub.f32 %v214_v3, %v224_v15 }
  0x9f   : > { %496 = vmatmul.msk.f32.vlgmr.msra.gmra.mxu0 %vm237_vm0, %v233_v13  ;;  %499 = vmatmul.msk.f32.gmra.mxu2 %vm237_vm0, %v236_v10 }
  0xa0   : > { %503 = vmatmul.msk.f32.gmra.mxu3 %vm237_vm0, %v282_v11  ;;  %500 = vmatmul.msk.f32.vlgmr.msra.gmra.mxu1 %vm237_vm0, %v279_v14 }
  0xa7   : > { %497 = vmatmul.msk.f32.gmra.mxu0 %vm237_vm0, %v234_v16 }
  0xa8   : > { %501 = vmatmul.msk.f32.gmra.mxu1 %vm237_vm0, %v280_v17 }
 0x11a   : > { %v273_v18 = vpop.f32.mrf.mxu2  ;;  %v318_v19 = vpop.f32.mrf.mxu3 }
 0x11b   : > { %327 = vst.msk [vmem:[%s831_s25 + $0x10] sm:$0xff] %vm324_vm1, %v273_v18  ;;  %337 = vrot.lane.b32.xlu0 %v273_v18, %s714_s28 }
 0x11c   : > { %510 = vst.msk [vmem:[%s831_s25 + $0x50] sm:$0xff] %vm324_vm1, %v318_v19  ;;  %v267_v20 = vpop.f32.mrf.mxu0 }
 0x11d   : > { %325 = vst.msk [vmem:[%s831_s25] sm:$0xff] %vm324_vm1, %v267_v20  ;;  %333 = vrot.lane.b32.xlu2 %v267_v20, %s714_s28  ;;  %v312_v21 = vpop.f32.mrf.mxu1 }
 0x11e   : > { %508 = vst.msk [vmem:[%s831_s25 + $0x40] sm:$0xff] %vm324_vm1, %v312_v21 }
 0x122   : > { %v276_v22 = vpop.f32.mrf.mxu2 }
 0x123   : > { %328 = vst.msk [vmem:[%s831_s25 + $0x18] sm:$0xff] %vm324_vm1, %v276_v22  ;;  %v321_v23 = vpop.f32.mrf.mxu3  ;;  %339 = vrot.lane.b32.xlu1 %v276_v22, %s714_s28 }
 0x124   : > { %511 = vst.msk [vmem:[%s831_s25 + $0x58] sm:$0xff] %vm324_vm1, %v321_v23  ;;  %v270_v24 = vpop.f32.mrf.mxu0 }
 0x125   : > { %359 = vrot.lane.b32.xlu2 %v312_v21, %s714_s28  ;;  %326 = vst.msk [vmem:[%s831_s25 + $0x8] sm:$0xff] %vm324_vm1, %v270_v24  ;;  %v315_v25 = vpop.f32.mrf.mxu1 }
 0x126   : > { %509 = vst.msk [vmem:[%s831_s25 + $0x48] sm:$0xff] %vm324_vm1, %v315_v25  ;;  %361 = vrot.lane.b32.xlu0 %v315_v25, %s714_s28 }
 0x12b   : > { %363 = vrot.lane.b32.xlu1 %v318_v19, %s714_s28 }
 0x12d   : > { %335 = vrot.lane.b32.xlu2 %v270_v24, %s714_s28 }
 0x135   : > { %365 = vrot.lane.b32.xlu2 %v321_v23, %s714_s28 }
 0x177   : > { %v334_v26 = vpop.permute.xlu2 %333 }
 0x178   : > { %504 = vst.msk [vmem:[%s831_s25 + $0x20] sm:$0xff] %vm324_vm1, %v334_v26 }
 0x17f   : > { %v360_v27 = vpop.permute.xlu2 %359 }
 0x180   : > { %512 = vst.msk [vmem:[%s831_s25 + $0x60] sm:$0xff] %vm324_vm1, %v360_v27 }
 0x187   : > { %v336_v28 = vpop.permute.xlu2 %335 }
 0x188   : > { %505 = vst.msk [vmem:[%s831_s25 + $0x28] sm:$0xff] %vm324_vm1, %v336_v28 }
 0x18d   : > { %v338_v29 = vpop.permute.xlu0 %337 }
 0x18e   : > { %506 = vst.msk [vmem:[%s831_s25 + $0x30] sm:$0xff] %vm324_vm1, %v338_v29 }
 0x18f   : > { %v366_v30 = vpop.permute.xlu2 %365 }
 0x190   : > { %515 = vst.msk [vmem:[%s831_s25 + $0x78] sm:$0xff] %vm324_vm1, %v366_v30 }
 0x195   : > { %v340_v31 = vpop.permute.xlu1 %339 }
 0x196   : > { %507 = vst.msk [vmem:[%s831_s25 + $0x38] sm:$0xff] %vm324_vm1, %v340_v31 }
 0x198   : > { %v362_v32 = vpop.permute.xlu0 %361 }
 0x199   : > { %513 = vst.msk [vmem:[%s831_s25 + $0x68] sm:$0xff] %vm324_vm1, %v362_v32 }
 0x19d   : > { %v364_v33 = vpop.permute.xlu1 %363 }
 0x19e   : > { %514 = vst.msk [vmem:[%s831_s25 + $0x70] sm:$0xff] %vm324_vm1, %v364_v33 }
 0x19f PF: > { %s16_s14 = sadd.s32 1, %s708_s14   ;;  %s890_s9 = smov %s692_s10 }
 0x1a0   : > { %p13_p2 = scmp.ge.s32.totalorder %s16_s14, 4   ;;  %s891_s10 = smov %s696_s11 }
 0x1a1   : > { %s892_s11 = smov %s800_s5  ;;  %s893_s12 = smov %s704_s13 }
 0x1a2   : > { %s894_s13 = smov %s896_s26  ;;  %15 = sbr.rel (!%p13_p2) target bundleno = 5 (0x5), region = 76 }
 0x1a7   :  { %406 = vsyncpa [#allocation3], 1 }
 0x1a8   :  { %408 = vsyncpa [#allocation3 + $0x1], 1 }
 0x1a9   :  { %409 = vsyncpa [#allocation5], 1 }
 0x1aa   :  { %411 = vsyncpa [#allocation5 + $0x1], 1 }

</bundles_post_ra>
